<compile_context>
chip_gen: v6e
topology: v6e:2x2x1
jax: 0.10.0
libtpu: 0.0.40
codegen_flags: <defaults>
</compile_context>

<pallas_src>
import jax
import jax.numpy as jnp
import numpy as np
from jax.experimental import pallas as pl
from jax.experimental.pallas import tpu as pltpu

# Shapes implied by the module: fc expects planes*8*8, so spatial must be 8x8.
N, C_IN, C_OUT, H, W, NUM_CLASSES = 2, 4, 8, 8, 8, 10
C_PAD = 8                # conv1 input channels zero-padded to a full sublane group
P = N * H * W            # 128 pixels -> exactly one full lane dimension
HW = H * W               # 64
EPS = 1e-5
TAPS = tuple((dy, dx) for dy in (-1, 0, 1) for dx in (-1, 0, 1))

assert C_PAD == C_OUT, "shared (9*C, 128) im2col mask assumes padded Cin == Cout"


# ------------------------------ kernel -------------------------------------- #

def coalesce_kernel(x_ref, mask_ref, w1_ref, g1_ref, b1_ref,
                    w2_ref, g2_ref, b2_ref, wfc_ref, bfc_ref, out_ref):
    inv_count = 1.0 / float(P)
    mask = mask_ref[...]                       # (9*C_PAD, 128) f32, lives in vregs

    def conv3x3(x, w_ref):
        """3x3 'same' conv = roll-based im2col (value) + one bf16 MXU matmul."""
        pieces = []
        for dy, dx in TAPS:
            s = dy * W + dx                    # lane shift for this tap
            pieces.append(x if s == 0 else pltpu.roll(x, shift=(-s) % P, axis=1))
        patch = jnp.concatenate(pieces, axis=0) * mask          # (9*C_PAD, 128) f32
        return jnp.dot(w_ref[...], patch.astype(jnp.bfloat16),
                       preferred_element_type=jnp.float32)      # (C_OUT, 128) f32

    def bn_train(x, g_ref, b_ref):
        """Training-mode BatchNorm2d over all N*H*W pixels (fused sum/sum-sq)."""
        sums = jnp.sum(jnp.concatenate([x, x * x], axis=0), axis=1,
                       keepdims=True) * inv_count                # (2*C_OUT, 1)
        mean = sums[:C_OUT]
        var = sums[C_OUT:] - mean * mean
        scale = g_ref[...] * jax.lax.rsqrt(var + EPS)            # gamma folded in
        shift = b_ref[...] - mean * scale
        return x * scale + shift

    x = x_ref[...]                              # (C_PAD, 128) f32, rows 4..7 are zero
    # conv1 -> bn1 -> relu
    o = jnp.maximum(bn_train(conv3x3(x, w1_ref), g1_ref, b1_ref), 0.0)
    # conv2 -> bn2 -> relu
    o = jnp.maximum(bn_train(conv3x3(o, w2_ref), g2_ref, b2_ref), 0.0)
    # conv2 -> bn2 again (same weights reused; NO relu — matches PyTorch forward)
    o = bn_train(conv3x3(o, w2_ref), g2_ref, b2_ref)

    # Channel-major flatten on the value (== out.view(-1, planes*8*8) on NCHW):
    #   flat[n, c*64 + hw] = o[c, n*64 + hw]
    rows = [jnp.concatenate([o[c:c + 1, n * HW:(n + 1) * HW] for c in range(C_OUT)],
                            axis=1)
            for n in range(N)]
    flat = jnp.concatenate(rows, axis=0)                         # (N, 512) f32

    # fc: single MXU matmul (2, 512) @ (512, 10) + bias (f32 accumulate).
    out_ref[...] = (jnp.dot(flat.astype(jnp.bfloat16), wfc_ref[...],
                            preferred_element_type=jnp.float32) + bfc_ref[...])


# ------------------------------ wrapper -------------------------------------- #

def _tap_masks():
    """Per-tap {0,1} masks over the 128 output pixels (host-precomputed)."""
    p = np.arange(P)
    n_img, h, w = p // HW, (p // W) % H, p % W
    m = np.zeros((len(TAPS), P), np.float32)
    for t, (dy, dx) in enumerate(TAPS):
        ok = (h + dy >= 0) & (h + dy < H) & (w + dx >= 0) & (w + dx < W)
        m[t] = ok.astype(np.float32)
        # Invariant required by the roll-based im2col: every UNmasked lane must
        # source from the same image and stay inside [0, P) (i.e. any lane that
        # wraps or crosses the image-0/image-1 boundary is masked).
        s = dy * W + dx
        src = p + s
        assert np.all((src[ok] >= 0) & (src[ok] < P)), (dy, dx)
        assert np.all(src[ok] // HW == n_img[ok]), (dy, dx)
    return m


def prepare_params(params):
    """Kernel-ready weights; call ONCE outside the jitted forward."""
    # PyTorch conv weight (Cout, Cin, 3, 3) -> (Cout, 9*C_PAD), taps ordered
    # (ky, kx, ci), Cin zero-padded to 8 for sublane alignment; bf16 for the MXU.
    w1 = jnp.transpose(params["w1"], (0, 2, 3, 1))                      # (8,3,3,4)
    w1 = jnp.pad(w1, ((0, 0), (0, 0), (0, 0), (0, C_PAD - C_IN)))       # (8,3,3,8)
    w1t = w1.reshape(C_OUT, 9 * C_PAD).astype(jnp.bfloat16)
    w2t = jnp.transpose(params["w2"], (0, 2, 3, 1)).reshape(
        C_OUT, 9 * C_PAD).astype(jnp.bfloat16)
    # Combined im2col mask: each tap's row mask repeated over its 8 channel rows.
    mask = jnp.asarray(np.repeat(_tap_masks(), C_PAD, axis=0))          # (72,128) f32
    return {
        "mask": mask,
        "w1t": w1t,
        "g1": params["g1"].reshape(-1, 1), "b1": params["b1"].reshape(-1, 1),
        "w2t": w2t,
        "g2": params["g2"].reshape(-1, 1), "b2": params["b2"].reshape(-1, 1),
        "wfc": params["fc_w"].T.astype(jnp.bfloat16),                   # (512, 10)
        "bfc": params["fc_b"].reshape(1, -1),                           # (1, 10) f32
    }


def coalesce_net_forward(x_nchw, kp):
    # (N, C, H, W) -> (C_PAD, N*H*W): channels on sublanes (zero-padded to 8),
    # pixels on the 128-lane axis.
    x0 = jnp.transpose(x_nchw.astype(jnp.float32), (1, 0, 2, 3)).reshape(C_IN, P)
    x0 = jnp.pad(x0, ((0, C_PAD - C_IN), (0, 0)))
    vmem = pl.BlockSpec(memory_space=pltpu.MemorySpace.VMEM)
    return pl.pallas_call(
        coalesce_kernel,
        out_shape=jax.ShapeDtypeStruct((N, NUM_CLASSES), jnp.float32),
        in_specs=[vmem] * 10,
        out_specs=vmem,
    )(x0, kp["mask"], kp["w1t"], kp["g1"], kp["b1"],
      kp["w2t"], kp["g2"], kp["b2"], kp["wfc"], kp["bfc"])


# ------------------------- reference (pure JAX, f32) -------------------------- #

def reference_forward(x_nchw, params):
    def conv(x, w):
        return jax.lax.conv_general_dilated(
            x, w, window_strides=(1, 1), padding=((1, 1), (1, 1)),
            dimension_numbers=("NCHW", "OIHW", "NCHW"))

    def bn(x, g, b):
        mean = jnp.mean(x, axis=(0, 2, 3), keepdims=True)
        var = jnp.mean(jnp.square(x - mean), axis=(0, 2, 3), keepdims=True)
        return ((x - mean) * jax.lax.rsqrt(var + EPS)
                * g.reshape(1, -1, 1, 1) + b.reshape(1, -1, 1, 1))

    out = jnp.maximum(bn(conv(x_nchw, params["w1"]), params["g1"], params["b1"]), 0.0)
    out = jnp.maximum(bn(conv(out, params["w2"]), params["g2"], params["b2"]), 0.0)
    out = bn(conv(out, params["w2"]), params["g2"], params["b2"])
    flat = out.reshape(N, C_OUT * H * W)
    return flat @ params["fc_w"].T + params["fc_b"]


# ------------------------------ main ----------------------------------------- #

def init_params(key):
    ks = jax.random.split(key, 8)
    return {
        "w1": 0.1 * jax.random.normal(ks[0], (C_OUT, C_IN, 3, 3), jnp.float32),
        "g1": 1.0 + 0.1 * jax.random.normal(ks[1], (C_OUT,), jnp.float32),
        "b1": 0.1 * jax.random.normal(ks[2], (C_OUT,), jnp.float32),
        "w2": 0.1 * jax.random.normal(ks[3], (C_OUT, C_OUT, 3, 3), jnp.float32),
        "g2": 1.0 + 0.1 * jax.random.normal(ks[4], (C_OUT,), jnp.float32),
        "b2": 0.1 * jax.random.normal(ks[5], (C_OUT,), jnp.float32),
        "fc_w": 0.05 * jax.random.normal(ks[6], (NUM_CLASSES, C_OUT * H * W), jnp.float32),
        "fc_b": 0.1 * jax.random.normal(ks[7], (NUM_CLASSES,), jnp.float32),
    }


if __name__ == "__main__":
    key = jax.random.PRNGKey(0)
    k_x, k_p = jax.random.split(key)
    x = jax.random.normal(k_x, (N, C_IN, H, W), jnp.float32)   # NCHW, like PyTorch
    params = init_params(k_p)
    kparams = prepare_params(params)          # weight prep hoisted out of the jit

    fwd = jax.jit(coalesce_net_forward)
    logits = fwd(x, kparams)
    jax.block_until_ready(logits)

    ref = reference_forward(x, params)
    assert logits.shape == (N, NUM_CLASSES)
    # Tolerance reflects bf16 MXU operands (per perf review) vs an f32 reference;
    # any structural error (masks, rolls, flatten, BN) would be O(1), far above this.
    np.testing.assert_allclose(np.asarray(logits), np.asarray(ref),
                               rtol=5e-2, atol=5e-2)
    print("KERNEL_OK")
</pallas_src>

<mosaic_0001>
module attributes {stable_mosaic.version = 11 : i64} {
  func.func @coalesce_kernel(%arg0: memref<8x128xf32, #tpu.memory_space<vmem>>, %arg1: memref<72x128xf32, #tpu.memory_space<vmem>>, %arg2: memref<8x72xbf16, #tpu.memory_space<vmem>>, %arg3: memref<8x1xf32, #tpu.memory_space<vmem>>, %arg4: memref<8x1xf32, #tpu.memory_space<vmem>>, %arg5: memref<8x72xbf16, #tpu.memory_space<vmem>>, %arg6: memref<8x1xf32, #tpu.memory_space<vmem>>, %arg7: memref<8x1xf32, #tpu.memory_space<vmem>>, %arg8: memref<512x10xbf16, #tpu.memory_space<vmem>>, %arg9: memref<1x10xf32, #tpu.memory_space<vmem>>, %arg10: memref<2x10xf32, #tpu.memory_space<vmem>>) attributes {dimension_semantics = [], scalar_prefetch = 0 : i64, scratch_operands = 0 : i64, tpu.core_type = #tpu.core_type<tc>} {
    %c0 = arith.constant 0 : index
    %c0_0 = arith.constant 0 : index
    %0 = vector.load %arg1[%c0, %c0_0] : memref<72x128xf32, #tpu.memory_space<vmem>>, vector<72x128xf32>
    %c0_1 = arith.constant 0 : index
    %c0_2 = arith.constant 0 : index
    %1 = vector.load %arg0[%c0_1, %c0_2] : memref<8x128xf32, #tpu.memory_space<vmem>>, vector<8x128xf32>
    %c9_i32 = arith.constant 9 : i32
    %2 = tpu.dynamic_rotate %1 by %c9_i32 dim 1 : vector<8x128xf32>, i32 -> vector<8x128xf32>
    %c8_i32 = arith.constant 8 : i32
    %3 = tpu.dynamic_rotate %1 by %c8_i32 dim 1 : vector<8x128xf32>, i32 -> vector<8x128xf32>
    %c7_i32 = arith.constant 7 : i32
    %4 = tpu.dynamic_rotate %1 by %c7_i32 dim 1 : vector<8x128xf32>, i32 -> vector<8x128xf32>
    %c1_i32 = arith.constant 1 : i32
    %5 = tpu.dynamic_rotate %1 by %c1_i32 dim 1 : vector<8x128xf32>, i32 -> vector<8x128xf32>
    %c127_i32 = arith.constant 127 : i32
    %6 = tpu.dynamic_rotate %1 by %c127_i32 dim 1 : vector<8x128xf32>, i32 -> vector<8x128xf32>
    %c121_i32 = arith.constant 121 : i32
    %7 = tpu.dynamic_rotate %1 by %c121_i32 dim 1 : vector<8x128xf32>, i32 -> vector<8x128xf32>
    %c120_i32 = arith.constant 120 : i32
    %8 = tpu.dynamic_rotate %1 by %c120_i32 dim 1 : vector<8x128xf32>, i32 -> vector<8x128xf32>
    %c119_i32 = arith.constant 119 : i32
    %9 = tpu.dynamic_rotate %1 by %c119_i32 dim 1 : vector<8x128xf32>, i32 -> vector<8x128xf32>
    %10 = tpu.concatenate %2, %3, %4, %5, %1, %6, %7, %8, %9 in 0 : vector<8x128xf32>, vector<8x128xf32>, vector<8x128xf32>, vector<8x128xf32>, vector<8x128xf32>, vector<8x128xf32>, vector<8x128xf32>, vector<8x128xf32>, vector<8x128xf32> -> vector<72x128xf32>
    %11 = arith.mulf %10, %0 : vector<72x128xf32>
    %c0_3 = arith.constant 0 : index
    %c0_4 = arith.constant 0 : index
    %12 = vector.load %arg2[%c0_3, %c0_4] : memref<8x72xbf16, #tpu.memory_space<vmem>>, vector<8x72xbf16>
    %13 = arith.truncf %11 : vector<72x128xf32> to vector<72x128xbf16>
    %cst = arith.constant dense<0.000000e+00> : vector<8x128xf32>
    %14 = tpu.matmul %12, %13, %cst {dimension_numbers = #tpu.dot_dimension_numbers<[1], [0], [0], [1], [0, 0, 1, 1], [], []>} : vector<8x72xbf16>, vector<72x128xbf16>, vector<8x128xf32> -> vector<8x128xf32>
    %15 = arith.mulf %14, %14 : vector<8x128xf32>
    %16 = tpu.concatenate %14, %15 in 0 : vector<8x128xf32>, vector<8x128xf32> -> vector<16x128xf32>
    %cst_5 = arith.constant dense<0.000000e+00> : vector<16xf32>
    %17 = vector.multi_reduction <add>, %16, %cst_5 [1] : vector<16x128xf32> to vector<16xf32>
    %18 = vector.shape_cast %17 : vector<16xf32> to vector<16x1xf32>
    %cst_6 = arith.constant 7.812500e-03 : f32
    %19 = vector.broadcast %cst_6 : f32 to vector<16x1xf32>
    %20 = arith.mulf %18, %19 : vector<16x1xf32>
    %21 = vector.extract_strided_slice %20 {offsets = [0, 0], sizes = [8, 1], strides = [1, 1]} : vector<16x1xf32> to vector<8x1xf32>
    %22 = vector.extract_strided_slice %20 {offsets = [8, 0], sizes = [8, 1], strides = [1, 1]} : vector<16x1xf32> to vector<8x1xf32>
    %23 = arith.mulf %21, %21 : vector<8x1xf32>
    %24 = arith.subf %22, %23 : vector<8x1xf32>
    %c0_7 = arith.constant 0 : index
    %c0_8 = arith.constant 0 : index
    %25 = vector.load %arg3[%c0_7, %c0_8] : memref<8x1xf32, #tpu.memory_space<vmem>>, vector<8x1xf32>
    %cst_9 = arith.constant 9.99999974E-6 : f32
    %26 = vector.broadcast %cst_9 : f32 to vector<8x1xf32>
    %27 = arith.addf %24, %26 : vector<8x1xf32>
    %28 = math.rsqrt %27 : vector<8x1xf32>
    %29 = arith.mulf %25, %28 : vector<8x1xf32>
    %c0_10 = arith.constant 0 : index
    %c0_11 = arith.constant 0 : index
    %30 = vector.load %arg4[%c0_10, %c0_11] : memref<8x1xf32, #tpu.memory_space<vmem>>, vector<8x1xf32>
    %31 = arith.mulf %21, %29 : vector<8x1xf32>
    %32 = arith.subf %30, %31 : vector<8x1xf32>
    %33 = vector.broadcast %29 : vector<8x1xf32> to vector<8x128xf32>
    %34 = arith.mulf %14, %33 : vector<8x128xf32>
    %35 = vector.broadcast %32 : vector<8x1xf32> to vector<8x128xf32>
    %36 = arith.addf %34, %35 : vector<8x128xf32>
    %cst_12 = arith.constant 0.000000e+00 : f32
    %37 = vector.broadcast %cst_12 : f32 to vector<8x128xf32>
    %38 = arith.maximumf %36, %37 : vector<8x128xf32>
    %c9_i32_13 = arith.constant 9 : i32
    %39 = tpu.dynamic_rotate %38 by %c9_i32_13 dim 1 : vector<8x128xf32>, i32 -> vector<8x128xf32>
    %c8_i32_14 = arith.constant 8 : i32
    %40 = tpu.dynamic_rotate %38 by %c8_i32_14 dim 1 : vector<8x128xf32>, i32 -> vector<8x128xf32>
    %c7_i32_15 = arith.constant 7 : i32
    %41 = tpu.dynamic_rotate %38 by %c7_i32_15 dim 1 : vector<8x128xf32>, i32 -> vector<8x128xf32>
    %c1_i32_16 = arith.constant 1 : i32
    %42 = tpu.dynamic_rotate %38 by %c1_i32_16 dim 1 : vector<8x128xf32>, i32 -> vector<8x128xf32>
    %c127_i32_17 = arith.constant 127 : i32
    %43 = tpu.dynamic_rotate %38 by %c127_i32_17 dim 1 : vector<8x128xf32>, i32 -> vector<8x128xf32>
    %c121_i32_18 = arith.constant 121 : i32
    %44 = tpu.dynamic_rotate %38 by %c121_i32_18 dim 1 : vector<8x128xf32>, i32 -> vector<8x128xf32>
    %c120_i32_19 = arith.constant 120 : i32
    %45 = tpu.dynamic_rotate %38 by %c120_i32_19 dim 1 : vector<8x128xf32>, i32 -> vector<8x128xf32>
    %c119_i32_20 = arith.constant 119 : i32
    %46 = tpu.dynamic_rotate %38 by %c119_i32_20 dim 1 : vector<8x128xf32>, i32 -> vector<8x128xf32>
    %47 = tpu.concatenate %39, %40, %41, %42, %38, %43, %44, %45, %46 in 0 : vector<8x128xf32>, vector<8x128xf32>, vector<8x128xf32>, vector<8x128xf32>, vector<8x128xf32>, vector<8x128xf32>, vector<8x128xf32>, vector<8x128xf32>, vector<8x128xf32> -> vector<72x128xf32>
    %48 = arith.mulf %47, %0 : vector<72x128xf32>
    %c0_21 = arith.constant 0 : index
    %c0_22 = arith.constant 0 : index
    %49 = vector.load %arg5[%c0_21, %c0_22] : memref<8x72xbf16, #tpu.memory_space<vmem>>, vector<8x72xbf16>
    %50 = arith.truncf %48 : vector<72x128xf32> to vector<72x128xbf16>
    %cst_23 = arith.constant dense<0.000000e+00> : vector<8x128xf32>
    %51 = tpu.matmul %49, %50, %cst_23 {dimension_numbers = #tpu.dot_dimension_numbers<[1], [0], [0], [1], [0, 0, 1, 1], [], []>} : vector<8x72xbf16>, vector<72x128xbf16>, vector<8x128xf32> -> vector<8x128xf32>
    %52 = arith.mulf %51, %51 : vector<8x128xf32>
    %53 = tpu.concatenate %51, %52 in 0 : vector<8x128xf32>, vector<8x128xf32> -> vector<16x128xf32>
    %cst_24 = arith.constant dense<0.000000e+00> : vector<16xf32>
    %54 = vector.multi_reduction <add>, %53, %cst_24 [1] : vector<16x128xf32> to vector<16xf32>
    %55 = vector.shape_cast %54 : vector<16xf32> to vector<16x1xf32>
    %cst_25 = arith.constant 7.812500e-03 : f32
    %56 = vector.broadcast %cst_25 : f32 to vector<16x1xf32>
    %57 = arith.mulf %55, %56 : vector<16x1xf32>
    %58 = vector.extract_strided_slice %57 {offsets = [0, 0], sizes = [8, 1], strides = [1, 1]} : vector<16x1xf32> to vector<8x1xf32>
    %59 = vector.extract_strided_slice %57 {offsets = [8, 0], sizes = [8, 1], strides = [1, 1]} : vector<16x1xf32> to vector<8x1xf32>
    %60 = arith.mulf %58, %58 : vector<8x1xf32>
    %61 = arith.subf %59, %60 : vector<8x1xf32>
    %c0_26 = arith.constant 0 : index
    %c0_27 = arith.constant 0 : index
    %62 = vector.load %arg6[%c0_26, %c0_27] : memref<8x1xf32, #tpu.memory_space<vmem>>, vector<8x1xf32>
    %cst_28 = arith.constant 9.99999974E-6 : f32
    %63 = vector.broadcast %cst_28 : f32 to vector<8x1xf32>
    %64 = arith.addf %61, %63 : vector<8x1xf32>
    %65 = math.rsqrt %64 : vector<8x1xf32>
    %66 = arith.mulf %62, %65 : vector<8x1xf32>
    %c0_29 = arith.constant 0 : index
    %c0_30 = arith.constant 0 : index
    %67 = vector.load %arg7[%c0_29, %c0_30] : memref<8x1xf32, #tpu.memory_space<vmem>>, vector<8x1xf32>
    %68 = arith.mulf %58, %66 : vector<8x1xf32>
    %69 = arith.subf %67, %68 : vector<8x1xf32>
    %70 = vector.broadcast %66 : vector<8x1xf32> to vector<8x128xf32>
    %71 = arith.mulf %51, %70 : vector<8x128xf32>
    %72 = vector.broadcast %69 : vector<8x1xf32> to vector<8x128xf32>
    %73 = arith.addf %71, %72 : vector<8x128xf32>
    %cst_31 = arith.constant 0.000000e+00 : f32
    %74 = vector.broadcast %cst_31 : f32 to vector<8x128xf32>
    %75 = arith.maximumf %73, %74 : vector<8x128xf32>
    %c9_i32_32 = arith.constant 9 : i32
    %76 = tpu.dynamic_rotate %75 by %c9_i32_32 dim 1 : vector<8x128xf32>, i32 -> vector<8x128xf32>
    %c8_i32_33 = arith.constant 8 : i32
    %77 = tpu.dynamic_rotate %75 by %c8_i32_33 dim 1 : vector<8x128xf32>, i32 -> vector<8x128xf32>
    %c7_i32_34 = arith.constant 7 : i32
    %78 = tpu.dynamic_rotate %75 by %c7_i32_34 dim 1 : vector<8x128xf32>, i32 -> vector<8x128xf32>
    %c1_i32_35 = arith.constant 1 : i32
    %79 = tpu.dynamic_rotate %75 by %c1_i32_35 dim 1 : vector<8x128xf32>, i32 -> vector<8x128xf32>
    %c127_i32_36 = arith.constant 127 : i32
    %80 = tpu.dynamic_rotate %75 by %c127_i32_36 dim 1 : vector<8x128xf32>, i32 -> vector<8x128xf32>
    %c121_i32_37 = arith.constant 121 : i32
    %81 = tpu.dynamic_rotate %75 by %c121_i32_37 dim 1 : vector<8x128xf32>, i32 -> vector<8x128xf32>
    %c120_i32_38 = arith.constant 120 : i32
    %82 = tpu.dynamic_rotate %75 by %c120_i32_38 dim 1 : vector<8x128xf32>, i32 -> vector<8x128xf32>
    %c119_i32_39 = arith.constant 119 : i32
    %83 = tpu.dynamic_rotate %75 by %c119_i32_39 dim 1 : vector<8x128xf32>, i32 -> vector<8x128xf32>
    %84 = tpu.concatenate %76, %77, %78, %79, %75, %80, %81, %82, %83 in 0 : vector<8x128xf32>, vector<8x128xf32>, vector<8x128xf32>, vector<8x128xf32>, vector<8x128xf32>, vector<8x128xf32>, vector<8x128xf32>, vector<8x128xf32>, vector<8x128xf32> -> vector<72x128xf32>
    %85 = arith.mulf %84, %0 : vector<72x128xf32>
    %c0_40 = arith.constant 0 : index
    %c0_41 = arith.constant 0 : index
    %86 = vector.load %arg5[%c0_40, %c0_41] : memref<8x72xbf16, #tpu.memory_space<vmem>>, vector<8x72xbf16>
    %87 = arith.truncf %85 : vector<72x128xf32> to vector<72x128xbf16>
    %cst_42 = arith.constant dense<0.000000e+00> : vector<8x128xf32>
    %88 = tpu.matmul %86, %87, %cst_42 {dimension_numbers = #tpu.dot_dimension_numbers<[1], [0], [0], [1], [0, 0, 1, 1], [], []>} : vector<8x72xbf16>, vector<72x128xbf16>, vector<8x128xf32> -> vector<8x128xf32>
    %89 = arith.mulf %88, %88 : vector<8x128xf32>
    %90 = tpu.concatenate %88, %89 in 0 : vector<8x128xf32>, vector<8x128xf32> -> vector<16x128xf32>
    %cst_43 = arith.constant dense<0.000000e+00> : vector<16xf32>
    %91 = vector.multi_reduction <add>, %90, %cst_43 [1] : vector<16x128xf32> to vector<16xf32>
    %92 = vector.shape_cast %91 : vector<16xf32> to vector<16x1xf32>
    %cst_44 = arith.constant 7.812500e-03 : f32
    %93 = vector.broadcast %cst_44 : f32 to vector<16x1xf32>
    %94 = arith.mulf %92, %93 : vector<16x1xf32>
    %95 = vector.extract_strided_slice %94 {offsets = [0, 0], sizes = [8, 1], strides = [1, 1]} : vector<16x1xf32> to vector<8x1xf32>
    %96 = vector.extract_strided_slice %94 {offsets = [8, 0], sizes = [8, 1], strides = [1, 1]} : vector<16x1xf32> to vector<8x1xf32>
    %97 = arith.mulf %95, %95 : vector<8x1xf32>
    %98 = arith.subf %96, %97 : vector<8x1xf32>
    %c0_45 = arith.constant 0 : index
    %c0_46 = arith.constant 0 : index
    %99 = vector.load %arg6[%c0_45, %c0_46] : memref<8x1xf32, #tpu.memory_space<vmem>>, vector<8x1xf32>
    %cst_47 = arith.constant 9.99999974E-6 : f32
    %100 = vector.broadcast %cst_47 : f32 to vector<8x1xf32>
    %101 = arith.addf %98, %100 : vector<8x1xf32>
    %102 = math.rsqrt %101 : vector<8x1xf32>
    %103 = arith.mulf %99, %102 : vector<8x1xf32>
    %c0_48 = arith.constant 0 : index
    %c0_49 = arith.constant 0 : index
    %104 = vector.load %arg7[%c0_48, %c0_49] : memref<8x1xf32, #tpu.memory_space<vmem>>, vector<8x1xf32>
    %105 = arith.mulf %95, %103 : vector<8x1xf32>
    %106 = arith.subf %104, %105 : vector<8x1xf32>
    %107 = vector.broadcast %103 : vector<8x1xf32> to vector<8x128xf32>
    %108 = arith.mulf %88, %107 : vector<8x128xf32>
    %109 = vector.broadcast %106 : vector<8x1xf32> to vector<8x128xf32>
    %110 = arith.addf %108, %109 : vector<8x128xf32>
    %111 = vector.extract_strided_slice %110 {offsets = [0, 0], sizes = [1, 64], strides = [1, 1]} : vector<8x128xf32> to vector<1x64xf32>
    %112 = vector.extract_strided_slice %110 {offsets = [1, 0], sizes = [1, 64], strides = [1, 1]} : vector<8x128xf32> to vector<1x64xf32>
    %113 = vector.extract_strided_slice %110 {offsets = [2, 0], sizes = [1, 64], strides = [1, 1]} : vector<8x128xf32> to vector<1x64xf32>
    %114 = vector.extract_strided_slice %110 {offsets = [3, 0], sizes = [1, 64], strides = [1, 1]} : vector<8x128xf32> to vector<1x64xf32>
    %115 = vector.extract_strided_slice %110 {offsets = [4, 0], sizes = [1, 64], strides = [1, 1]} : vector<8x128xf32> to vector<1x64xf32>
    %116 = vector.extract_strided_slice %110 {offsets = [5, 0], sizes = [1, 64], strides = [1, 1]} : vector<8x128xf32> to vector<1x64xf32>
    %117 = vector.extract_strided_slice %110 {offsets = [6, 0], sizes = [1, 64], strides = [1, 1]} : vector<8x128xf32> to vector<1x64xf32>
    %118 = vector.extract_strided_slice %110 {offsets = [7, 0], sizes = [1, 64], strides = [1, 1]} : vector<8x128xf32> to vector<1x64xf32>
    %119 = tpu.concatenate %111, %112, %113, %114, %115, %116, %117, %118 in 1 : vector<1x64xf32>, vector<1x64xf32>, vector<1x64xf32>, vector<1x64xf32>, vector<1x64xf32>, vector<1x64xf32>, vector<1x64xf32>, vector<1x64xf32> -> vector<1x512xf32>
    %120 = vector.extract_strided_slice %110 {offsets = [0, 64], sizes = [1, 64], strides = [1, 1]} : vector<8x128xf32> to vector<1x64xf32>
    %121 = vector.extract_strided_slice %110 {offsets = [1, 64], sizes = [1, 64], strides = [1, 1]} : vector<8x128xf32> to vector<1x64xf32>
    %122 = vector.extract_strided_slice %110 {offsets = [2, 64], sizes = [1, 64], strides = [1, 1]} : vector<8x128xf32> to vector<1x64xf32>
    %123 = vector.extract_strided_slice %110 {offsets = [3, 64], sizes = [1, 64], strides = [1, 1]} : vector<8x128xf32> to vector<1x64xf32>
    %124 = vector.extract_strided_slice %110 {offsets = [4, 64], sizes = [1, 64], strides = [1, 1]} : vector<8x128xf32> to vector<1x64xf32>
    %125 = vector.extract_strided_slice %110 {offsets = [5, 64], sizes = [1, 64], strides = [1, 1]} : vector<8x128xf32> to vector<1x64xf32>
    %126 = vector.extract_strided_slice %110 {offsets = [6, 64], sizes = [1, 64], strides = [1, 1]} : vector<8x128xf32> to vector<1x64xf32>
    %127 = vector.extract_strided_slice %110 {offsets = [7, 64], sizes = [1, 64], strides = [1, 1]} : vector<8x128xf32> to vector<1x64xf32>
    %128 = tpu.concatenate %120, %121, %122, %123, %124, %125, %126, %127 in 1 : vector<1x64xf32>, vector<1x64xf32>, vector<1x64xf32>, vector<1x64xf32>, vector<1x64xf32>, vector<1x64xf32>, vector<1x64xf32>, vector<1x64xf32> -> vector<1x512xf32>
    %129 = tpu.concatenate %119, %128 in 0 : vector<1x512xf32>, vector<1x512xf32> -> vector<2x512xf32>
    %130 = arith.truncf %129 : vector<2x512xf32> to vector<2x512xbf16>
    %c0_50 = arith.constant 0 : index
    %c0_51 = arith.constant 0 : index
    %131 = vector.load %arg8[%c0_50, %c0_51] : memref<512x10xbf16, #tpu.memory_space<vmem>>, vector<512x10xbf16>
    %cst_52 = arith.constant dense<0.000000e+00> : vector<2x10xf32>
    %132 = tpu.matmul %130, %131, %cst_52 {dimension_numbers = #tpu.dot_dimension_numbers<[1], [0], [0], [1], [0, 0, 1, 1], [], []>} : vector<2x512xbf16>, vector<512x10xbf16>, vector<2x10xf32> -> vector<2x10xf32>
    %c0_53 = arith.constant 0 : index
    %c0_54 = arith.constant 0 : index
    %133 = vector.load %arg9[%c0_53, %c0_54] : memref<1x10xf32, #tpu.memory_space<vmem>>, vector<1x10xf32>
    %134 = vector.broadcast %133 : vector<1x10xf32> to vector<2x10xf32>
    %135 = arith.addf %132, %134 : vector<2x10xf32>
    %c0_55 = arith.constant 0 : index
    %c0_56 = arith.constant 0 : index
    %136 = vector.load %arg10[%c0_55, %c0_56] : memref<2x10xf32, #tpu.memory_space<vmem>>, vector<2x10xf32>
    tpu.vector_store %arg10[%c0_55, %c0_56], %135 {strides = array<i32>} : memref<2x10xf32, #tpu.memory_space<vmem>>, vector<2x10xf32>,
    return
  }
}

</mosaic_0001>

<bundles_post_ra>
// kernel: coalesce_net_forward.1
= control target key start
LH: loop header
LB: loop body
LE: loop exit
PB: predicated region body
PF: predicated region fallthrough
CT: control target
= control target key end

     0   :  { %s1023_s15 = smov 119   ;;  %s1024_s16 = smov 120   ;;  %v1025_v1 = vmov 0.0   ;;  %vm1030_vm0 = vmmov 0   ;;  %s1367_s0 = inlined_call_operand.vmem [shape: f32[8,128], index: 0, kind: input, shape index: {}]   ;;  %s1368_s1 = inlined_call_operand.vmem [shape: f32[72,128], index: 1, kind: input, shape index: {}]   ;;  %s1369_s2 = inlined_call_operand.vmem [shape: bf16[8,72], index: 2, kind: input, shape index: {}]   ;;  %s1370_s3 = inlined_call_operand.vmem [shape: f32[8,1], index: 3, kind: input, shape index: {}]   ;;  %s1371_s4 = inlined_call_operand.vmem [shape: f32[8,1], index: 4, kind: input, shape index: {}]   ;;  %s1372_s5 = inlined_call_operand.vmem [shape: bf16[8,72], index: 5, kind: input, shape index: {}]   ;;  %s1373_s6 = inlined_call_operand.vmem [shape: f32[8,1], index: 6, kind: input, shape index: {}]   ;;  %s1374_s7 = inlined_call_operand.vmem [shape: f32[8,1], index: 7, kind: input, shape index: {}]   ;;  %s1375_s8 = inlined_call_operand.vmem [shape: bf16[512,10], index: 8, kind: input, shape index: {}]   ;;  %s1376_s9 = inlined_call_operand.vmem [shape: f32[1,10], index: 9, kind: input, shape index: {}]   ;;  %s1377_s10 = inlined_call_operand.hbm [shape: f32[2,10], index: 10, kind: output, shape index: {}]  }
   0x1   :  { %v46_v0 = vld [vmem:[%s1367_s0] sm:$0xff]  ;;  %886 = vmatprep.subr.bf16.mxu0 %v1025_v1  ;;  %900 = vmatprep.subr.bf16.mxu1 %v1025_v1  ;;  %s1026_s17 = smov 121   ;;  %s1027_s18 = smov 127  }
   0x2   :  { %61 = vrot.lane.b32.xlu0 %v46_v0, %s1023_s15  ;;  %59 = vrot.lane.b32.xlu1 %v46_v0, %s1024_s16  ;;  %s1028_s19 = smov 1   ;;  %s1029_s0 = smov 7  }
   0x3   :  { %896 = vmatprep.mubr.msk.bf16.mxu0 %vm1030_vm0, %v1025_v1  ;;  %910 = vmatprep.mubr.msk.bf16.mxu1 %vm1030_vm0, %v1025_v1  ;;  %s1031_s20 = smov 8   ;;  %s1032_s21 = smov 9  }
   0x6   :  { %57 = vrot.lane.b32.xlu0 %v46_v0, %s1026_s17  ;;  %55 = vrot.lane.b32.xlu1 %v46_v0, %s1027_s18 }
   0xa   :  { %53 = vrot.lane.b32.xlu1 %v46_v0, %s1028_s19  ;;  %51 = vrot.lane.b32.xlu0 %v46_v0, %s1029_s0 }
   0xe   :  { %49 = vrot.lane.b32.xlu1 %v46_v0, %s1031_s20  ;;  %47 = vrot.lane.b32.xlu0 %v46_v0, %s1032_s21 }
   0xf   :  { %15 = vsyncpa [#allocation3], 0  ;;  %v1111_v2 = vld [vmem:[%s1368_s1 + $0x40] sm:$0xff]  ;;  %v1116_v5 = vld [vmem:[%s1368_s1 + $0x38] sm:$0xff]  ;;  %vm82_vm1 = vcmask 1043456   ;;  %vm78_vm2 = vcmask 588800  }
  0x10   :  { %v1122_v7 = vld [vmem:[%s1368_s1 + $0x30] sm:$0xff]  ;;  %v1128_v10 = vld [vmem:[%s1368_s1 + $0x20] sm:$0xff]  ;;  %v1133_v11 = vld [vmem:[%s1368_s1 + $0x28] sm:$0xff]  ;;  %v1033_v40 = vmov 0   ;;  %vm383_vm3 = vcmask 523264   ;;  %vm420_vm4 = vcmask 1040384  }
  0x11   :  { %v67_v16 = vmul.f32 %v46_v0, %v1128_v10  ;;  %v1143_v19 = vld [vmem:[%s1368_s1 + $0x18] sm:$0xff]  ;;  %v1148_v20 = vld [vmem:[%s1368_s1 + $0x10] sm:$0xff]  ;;  %v1156_v26 = vld [vmem:[%s1368_s1 + $0x8] sm:$0xff]  ;;  %941 = vset.pattern.permute.xlu0 %v1033_v40  ;;  %942 = vset.pattern.permute.xlu1 %v1033_v40  ;;  %s1035_s14 = smov [#allocation2]   ;;  %vm772_vm5 = vcmask 74752  }
  0x12   :  { %v1161_v27 = vld [vmem:[%s1368_s1] sm:$0xff]  ;;  %s780_s22 = sshll.u32 %s1035_s14, 4  ;;  %s781_s22 = int_to_ptr.vmem [resolvable:$true] %s780_s22 }
  0x13   :  { %v72_v34 = vld [vmem:[%s1369_s2] sm:$0xf]  ;;  %s1001_s23 = scalar_lea.vmem %s781_s22, 32  ;;  %p1006_p1 = scmp.lt.s32.totalorder %s781_s22, %s781_s22 }
  0x14   :  { %v135_v48 = vld [vmem:[%s1370_s3] sm:$0xff]  ;;  %p1002_p0 = scmp.ne.s32.totalorder %s781_s22, %s1001_s23  ;;  %p1007_p2 = scmp.lt.s32.totalorder %s1001_s23, %s1001_s23 }
  0x15   :  { %v139_v51 = vld [vmem:[%s1371_s4] sm:$0xff] }
  0x16   :  { %p1008_p3 = por %p1007_p2, %p1006_p1 }
  0x18   :  { %p1009_p4 = pnand %p1008_p3, %p1002_p0 }
  0x74   :  { %v62_v3 = vpop.permute.xlu0 %61  ;;  %v60_v4 = vpop.permute.xlu1 %59 }
  0x75   :  { %v71_v6 = vmul.f32 %v62_v3, %v1111_v2  ;;  %v70_v9 = vmul.f32 %v60_v4, %v1116_v5 }
  0x77   :  { %v77_v8 = vpack.c.bf16 %v71_v6, %v71_v6 }
  0x78   :  { %v58_v12 = vpop.permute.xlu0 %57  ;;  %v56_v13 = vpop.permute.xlu1 %55 }
  0x79   :  { %v69_v14 = vmul.f32 %v58_v12, %v1122_v7  ;;  %v84_v15 = vsel %vm82_vm1, %v77_v8, 0  ;;  %v68_v17 = vmul.f32 %v56_v13, %v1133_v11 }
  0x7a   :  { %887 = vmatpush3.bf16.msra.mxu0 %v84_v15 }
  0x7b   :  { %v76_v18 = vpack.c.bf16 %v70_v9, %v69_v14  ;;  %888 = vmatprep.subr.bf16.mxu0 %v1025_v1  ;;  %v75_v23 = vpack.c.bf16 %v68_v17, %v67_v16 }
  0x7c   :  { %v54_v21 = vpop.permute.xlu1 %53  ;;  %v52_v22 = vpop.permute.xlu0 %51 }
  0x7d   :  { %v66_v24 = vmul.f32 %v54_v21, %v1143_v19  ;;  %v65_v25 = vmul.f32 %v52_v22, %v1148_v20 }
  0x7e   :  { %889 = vmatpush3.bf16.msra.mxu0 %v76_v18 }
  0x7f   :  { %890 = vmatprep.subr.bf16.mxu0 %v1025_v1  ;;  %v74_v30 = vpack.c.bf16 %v66_v24, %v65_v25 }
  0x80   :  { %v50_v28 = vpop.permute.xlu1 %49  ;;  %v48_v29 = vpop.permute.xlu0 %47 }
  0x81   :  { %v64_v31 = vmul.f32 %v50_v28, %v1156_v26  ;;  %v63_v32 = vmul.f32 %v48_v29, %v1161_v27  ;;  %v1205_v28 = vld [vmem:[%s1372_s5] sm:$0xf] }
  0x82   :  { %891 = vmatpush3.bf16.msra.mxu0 %v75_v23 }
  0x83   :  { %892 = vmatprep.subr.bf16.mxu0 %v1025_v1  ;;  %v73_v33 = vpack.c.bf16 %v64_v31, %v63_v32 }
  0x86   :  { %893 = vmatpush3.bf16.msra.mxu0 %v74_v30 }
  0x87   :  { %894 = vmatprep.subr.bf16.mxu0 %v1025_v1 }
  0x8a   :  { %895 = vmatpush3.bf16.msra.mxu0 %v73_v33 }
  0x8b   :  { %914 = vmatprep.subr.bf16.mxu0 %v1025_v1 }
  0x8d   :  { %897 = vmatmul.mubr.msk.bf16.vlgmr.msra.gmra.mxu0 %vm78_vm2, %v72_v34 }
  0x8e   :  { %924 = vmatprep.mubr.msk.bf16.mxu0 %vm1030_vm0, %v1025_v1 }
 0x14d   :  { %v120_v35 = vpop.f32.mrf.mxu0 }
 0x14e   :  { %127 = vadd.xlane.f32.xlu0 %v120_v35  ;;  %v126_v36 = vmul.f32 %v120_v35, %v120_v35 }
 0x14f   :  { %v898_v37 = vpop.f32.mrf.mxu0 }
 0x150   :  { %129 = vadd.xlane.f32.xlu1 %v126_v36 }
 0x151   :  { %v123_v38 = vpop.f32.mrf.mxu0 }
 0x153   :  { %v899_v39 = vpop.f32.mrf.mxu0 }
 0x1d7   :  { %v128_v41 = vpop.xlane.xlu0 %127 }
 0x1d8   :  { %v131_v42 = vmul.f32 0.0078125, %v128_v41  ;;  %v1212_v41 = vld [vmem:[%s1373_s6] sm:$0xff] }
 0x1d9   :  { %v130_v43 = vpop.xlane.xlu1 %129 }
 0x1da   :  { %v133_v44 = vmul.f32 %v131_v42, %v131_v42  ;;  %v132_v45 = vmul.f32 0.0078125, %v130_v43 }
 0x1dc   :  { %v134_v46 = vsub.f32 %v132_v45, %v133_v44  ;;  %v1218_v44 = vld [vmem:[%s1374_s7] sm:$0xff] }
 0x1de   :  { %v136_v47 = vadd.f32 1e-05, %v134_v46 }
 0x1e0   :  { %995 = vrsqrt.f32 %v136_v47 }
 0x1ed   :  { %v996_v49 = vpop.eup %995 }
 0x1ee   :  { %v138_v50 = vmul.f32 %v996_v49, %v135_v48 }
 0x1f0   :  { %144 = vperm.xlu0 %941, %v138_v50   ;;  %v140_v52 = vmul.f32 %v138_v50, %v131_v42 }
 0x1f2   :  { %v141_v53 = vsub.f32 %v139_v51, %v140_v52 }
 0x1f4   :  { %150 = vperm.xlu1 %942, %v141_v53  }
 0x26b   :  { %v145_v54 = vpop.permute.xlu0 %144 }
 0x26c   :  { %v147_v55 = vmul.f32 %v145_v54, %v120_v35 }
 0x26f   :  { %v151_v56 = vpop.permute.xlu1 %150 }
 0x270   :  { %v153_v57 = vadd.f32 %v151_v56, %v147_v55 }
 0x272   :  { %v154_v58 = vmax.f32 %v153_v57, 0.0 }
 0x274   :  { %155 = vrot.lane.b32.xlu0 %v154_v58, %s1032_s21  ;;  %169 = vrot.lane.b32.xlu1 %v154_v58, %s1023_s15  ;;  %v175_v9 = vmul.f32 %v154_v58, %v1128_v10 }
 0x278   :  { %165 = vrot.lane.b32.xlu1 %v154_v58, %s1026_s17 }
 0x27c   :  { %167 = vrot.lane.b32.xlu1 %v154_v58, %s1024_s16 }
 0x280   :  { %163 = vrot.lane.b32.xlu1 %v154_v58, %s1027_s18 }
 0x284   :  { %159 = vrot.lane.b32.xlu1 %v154_v58, %s1029_s0 }
 0x288   :  { %161 = vrot.lane.b32.xlu1 %v154_v58, %s1028_s19 }
 0x28c   :  { %157 = vrot.lane.b32.xlu1 %v154_v58, %s1031_s20 }
 0x2e6   :  { %v170_v59 = vpop.permute.xlu1 %169  ;;  %v156_v18 = vpop.permute.xlu0 %155 }
 0x2e7   :  { %v179_v60 = vmul.f32 %v170_v59, %v1111_v2  ;;  %v171_v23 = vmul.f32 %v156_v18, %v1161_v27 }
 0x2e9   :  { %v185_v61 = vpack.c.bf16 %v179_v60, %v179_v60 }
 0x2ea   :  { %v166_v62 = vpop.permute.xlu1 %165 }
 0x2eb   :  { %v190_v63 = vsel %vm82_vm1, %v185_v61, 0  ;;  %v177_v3 = vmul.f32 %v166_v62, %v1122_v7 }
 0x2ec   :  { %901 = vmatpush3.bf16.msra.mxu1 %v190_v63 }
 0x2ed   :  { %902 = vmatprep.subr.bf16.mxu1 %v1025_v1 }
 0x2ee   :  { %v168_v0 = vpop.permute.xlu1 %167 }
 0x2ef   :  { %v178_v4 = vmul.f32 %v168_v0, %v1116_v5 }
 0x2f1   :  { %v184_v6 = vpack.c.bf16 %v178_v4, %v177_v3 }
 0x2f2   :  { %v164_v8 = vpop.permute.xlu1 %163 }
 0x2f3   :  { %v176_v12 = vmul.f32 %v164_v8, %v1133_v11  ;;  %903 = vmatpush3.bf16.msra.mxu1 %v184_v6 }
 0x2f4   :  { %904 = vmatprep.subr.bf16.mxu1 %v1025_v1 }
 0x2f5   :  { %v183_v13 = vpack.c.bf16 %v176_v12, %v175_v9 }
 0x2f6   :  { %v160_v14 = vpop.permute.xlu1 %159 }
 0x2f7   :  { %905 = vmatpush3.bf16.msra.mxu1 %v183_v13  ;;  %v173_v16 = vmul.f32 %v160_v14, %v1148_v20 }
 0x2f8   :  { %906 = vmatprep.subr.bf16.mxu1 %v1025_v1 }
 0x2fa   :  { %v162_v15 = vpop.permute.xlu1 %161 }
 0x2fb   :  { %v174_v17 = vmul.f32 %v162_v15, %v1143_v19 }
 0x2fd   :  { %v182_v21 = vpack.c.bf16 %v174_v17, %v173_v16 }
 0x2fe   :  { %v158_v22 = vpop.permute.xlu1 %157 }
 0x2ff   :  { %v172_v24 = vmul.f32 %v158_v22, %v1156_v26  ;;  %907 = vmatpush3.bf16.msra.mxu1 %v182_v21 }
 0x300   :  { %908 = vmatprep.subr.bf16.mxu1 %v1025_v1 }
 0x301   :  { %v181_v25 = vpack.c.bf16 %v172_v24, %v171_v23 }
 0x303   :  { %909 = vmatpush3.bf16.msra.mxu1 %v181_v25  ;;  %v963_v25 = vld [vmem:[%s1375_s8 + $0x78] sm:$0xff]  }
 0x304   :  { %842 = vmatprep.subr.bf16.mxu1 %v963_v25 }
 0x306   :  { %911 = vmatmul.mubr.msk.bf16.vlgmr.msra.gmra.mxu1 %vm78_vm2, %v1205_v28 }
 0x3c6   :  { %v226_v29 = vpop.f32.mrf.mxu1 }
 0x3c7   :  { %233 = vadd.xlane.f32.xlu0 %v226_v29  ;;  %v232_v30 = vmul.f32 %v226_v29, %v226_v29 }
 0x3c8   :  { %v912_v31 = vpop.f32.mrf.mxu1 }
 0x3c9   :  { %235 = vadd.xlane.f32.xlu1 %v232_v30  ;;  %v966_v30 = vld [vmem:[%s1375_s8 + $0xb8] sm:$0xff]   ;;  %v967_v31 = vld [vmem:[%s1375_s8 + $0x70] sm:$0xff]  }
 0x3ca   :  { %v229_v32 = vpop.f32.mrf.mxu1 }
 0x3cb   :  { %v969_v32 = vld [vmem:[%s1375_s8 + $0xf0] sm:$0xff]  }
 0x3cc   :  { %v913_v33 = vpop.f32.mrf.mxu1 }
 0x3cd   :  { %v968_v33 = vld [vmem:[%s1375_s8 + $0x30] sm:$0xff]  }
 0x450   :  { %v234_v34 = vpop.xlane.xlu0 %233 }
 0x451   :  { %v237_v35 = vmul.f32 0.0078125, %v234_v34  ;;  %v970_v34 = vld [vmem:[%s1375_s8 + $0xb0] sm:$0xff]  }
 0x452   :  { %v236_v36 = vpop.xlane.xlu1 %235 }
 0x453   :  { %v239_v37 = vmul.f32 %v237_v35, %v237_v35  ;;  %v238_v38 = vmul.f32 0.0078125, %v236_v36  ;;  %v973_v36 = vld [vmem:[%s1375_s8 + $0xe8] sm:$0xff]  }
 0x455   :  { %v240_v39 = vsub.f32 %v238_v38, %v239_v37  ;;  %v972_v37 = vld [vmem:[%s1375_s8 + $0x28] sm:$0xff]  }
 0x456   :  { %v974_v38 = vld [vmem:[%s1375_s8 + $0xa8] sm:$0xff]  }
 0x457   :  { %v242_v40 = vadd.f32 1e-05, %v240_v39  ;;  %v975_v39 = vld [vmem:[%s1375_s8 + $0x60] sm:$0xff]  }
 0x459   :  { %997 = vrsqrt.f32 %v242_v40  ;;  %v977_v40 = vld [vmem:[%s1375_s8 + $0xe0] sm:$0xff]  }
 0x466   :  { %v998_v42 = vpop.eup %997 }
 0x467   :  { %v244_v43 = vmul.f32 %v998_v42, %v1212_v41  ;;  %v978_v42 = vld [vmem:[%s1375_s8 + $0xa0] sm:$0xff]  }
 0x469   :  { %250 = vperm.xlu0 %941, %v244_v43   ;;  %v246_v45 = vmul.f32 %v244_v43, %v237_v35  ;;  %v971_v35 = vld [vmem:[%s1375_s8 + $0x68] sm:$0xff]   ;;  %v979_v43 = vld [vmem:[%s1375_s8 + $0x58] sm:$0xff]  }
 0x46b   :  { %v247_v46 = vsub.f32 %v1218_v44, %v246_v45  ;;  %v980_v45 = vld [vmem:[%s1375_s8 + $0x18] sm:$0xff]  }
 0x46d   :  { %256 = vperm.xlu1 %942, %v247_v46   ;;  %v982_v46 = vld [vmem:[%s1375_s8 + $0x98] sm:$0xff]  }
 0x4e4   :  { %v251_v47 = vpop.permute.xlu0 %250 }
 0x4e5   :  { %v253_v48 = vmul.f32 %v251_v47, %v226_v29  ;;  %v965_v29 = vld [vmem:[%s1375_s8 + $0xf8] sm:$0xff]   ;;  %v983_v47 = vld [vmem:[%s1375_s8 + $0x50] sm:$0xff]  }
 0x4e8   :  { %v257_v49 = vpop.permute.xlu1 %256 }
 0x4e9   :  { %v259_v50 = vadd.f32 %v257_v49, %v253_v48  ;;  %v984_v48 = vld [vmem:[%s1375_s8 + $0x10] sm:$0xff]  }
 0x4ea   :  { %v985_v49 = vld [vmem:[%s1375_s8 + $0xd0] sm:$0xff]  }
 0x4eb   :  { %v260_v51 = vmax.f32 %v259_v50, 0.0  ;;  %v986_v50 = vld [vmem:[%s1375_s8 + $0x90] sm:$0xff]  }
 0x4ed   :  { %271 = vrot.lane.b32.xlu1 %v260_v51, %s1026_s17  ;;  %275 = vrot.lane.b32.xlu0 %v260_v51, %s1023_s15  ;;  %v281_v3 = vmul.f32 %v260_v51, %v1128_v10 }
 0x4f1   :  { %269 = vrot.lane.b32.xlu1 %v260_v51, %s1027_s18  ;;  %273 = vrot.lane.b32.xlu0 %v260_v51, %s1024_s16 }
 0x4f5   :  { %267 = vrot.lane.b32.xlu1 %v260_v51, %s1028_s19  ;;  %265 = vrot.lane.b32.xlu0 %v260_v51, %s1029_s0 }
 0x4f9   :  { %263 = vrot.lane.b32.xlu1 %v260_v51, %s1031_s20  ;;  %261 = vrot.lane.b32.xlu0 %v260_v51, %s1032_s21  ;;  %v987_v51 = vld [vmem:[%s1375_s8 + $0x48] sm:$0xff]   ;;  %s1034_s20 = smov 64  }
 0x55f   :  { %v272_v52 = vpop.permute.xlu1 %271  ;;  %v276_v53 = vpop.permute.xlu0 %275 }
 0x560   :  { %v285_v54 = vmul.f32 %v276_v53, %v1111_v2  ;;  %v283_v58 = vmul.f32 %v272_v52, %v1122_v7  ;;  %v988_v53 = vld [vmem:[%s1375_s8 + $0x8] sm:$0xff]  }
 0x562   :  { %v290_v55 = vpack.c.bf16 %v285_v54, %v285_v54  ;;  %v989_v54 = vld [vmem:[%s1375_s8 + $0xc8] sm:$0xff]  }
 0x563   :  { %v270_v56 = vpop.permute.xlu1 %269  ;;  %v274_v57 = vpop.permute.xlu0 %273 }
 0x564   :  { %v292_v59 = vsel %vm82_vm1, %v290_v55, 0  ;;  %v284_v60 = vmul.f32 %v274_v57, %v1116_v5  ;;  %v282_v62 = vmul.f32 %v270_v56, %v1133_v11  ;;  %v990_v55 = vld [vmem:[%s1375_s8 + $0x88] sm:$0xff]   ;;  %v991_v57 = vld [vmem:[%s1375_s8 + $0x40] sm:$0xff]  }
 0x565   :  { %915 = vmatpush3.bf16.msra.mxu0 %v292_v59  ;;  %v992_v59 = vld [vmem:[%s1375_s8] sm:$0xff]  }
 0x566   :  { %v289_v61 = vpack.c.bf16 %v284_v60, %v283_v58  ;;  %916 = vmatprep.subr.bf16.mxu0 %v1025_v1  ;;  %v288_v2 = vpack.c.bf16 %v282_v62, %v281_v3  ;;  %v994_v62 = vld [vmem:[%s1375_s8 + $0x80] sm:$0xff]  }
 0x567   :  { %v268_v63 = vpop.permute.xlu1 %267  ;;  %v266_v0 = vpop.permute.xlu0 %265 }
 0x568   :  { %v280_v7 = vmul.f32 %v268_v63, %v1143_v19  ;;  %v279_v4 = vmul.f32 %v266_v0, %v1148_v20 }
 0x569   :  { %917 = vmatpush3.bf16.msra.mxu0 %v289_v61  ;;  %v993_v61 = vld [vmem:[%s1375_s8 + $0xc0] sm:$0xff]  }
 0x56a   :  { %918 = vmatprep.subr.bf16.mxu0 %v1025_v1  ;;  %v287_v8 = vpack.c.bf16 %v280_v7, %v279_v4 }
 0x56b   :  { %v264_v6 = vpop.permute.xlu1 %263  ;;  %v262_v5 = vpop.permute.xlu0 %261 }
 0x56c   :  { %v278_v11 = vmul.f32 %v264_v6, %v1156_v26  ;;  %v277_v9 = vmul.f32 %v262_v5, %v1161_v27 }
 0x56d   :  { %919 = vmatpush3.bf16.msra.mxu0 %v288_v2 }
 0x56e   :  { %920 = vmatprep.subr.bf16.mxu0 %v1025_v1  ;;  %v286_v10 = vpack.c.bf16 %v278_v11, %v277_v9 }
 0x571   :  { %921 = vmatpush3.bf16.msra.mxu0 %v287_v8 }
 0x572   :  { %922 = vmatprep.subr.bf16.mxu0 %v1025_v1 }
 0x575   :  { %923 = vmatpush3.bf16.msra.mxu0 %v286_v10 }
 0x576   :  { %864 = vmatprep.subr.bf16.mxu0 %v965_v29 }
 0x578   :  { %925 = vmatmul.mubr.msk.bf16.vlgmr.msra.gmra.mxu0 %vm78_vm2, %v1205_v28  ;;  %v964_v28 = vld [vmem:[%s1375_s8 + $0x38] sm:$0xff]  }
 0x579   :  { %843 = vmatpush3.bf16.msra.mxu1 %v964_v28  ;;  %865 = vmatpush3.bf16.msra.mxu0 %v966_v30 }
 0x57a   :  { %844 = vmatprep.subr.bf16.mxu1 %v967_v31  ;;  %866 = vmatprep.subr.bf16.mxu0 %v969_v32 }
 0x57d   :  { %845 = vmatpush3.bf16.msra.mxu1 %v968_v33  ;;  %867 = vmatpush3.bf16.msra.mxu0 %v970_v34 }
 0x57e   :  { %846 = vmatprep.subr.bf16.mxu1 %v971_v35  ;;  %868 = vmatprep.subr.bf16.mxu0 %v973_v36 }
 0x581   :  { %847 = vmatpush3.bf16.msra.mxu1 %v972_v37  ;;  %869 = vmatpush3.bf16.msra.mxu0 %v974_v38 }
 0x582   :  { %848 = vmatprep.subr.bf16.mxu1 %v975_v39  ;;  %870 = vmatprep.subr.bf16.mxu0 %v977_v40 }
 0x585   :  { %871 = vmatpush3.bf16.msra.mxu0 %v978_v42 }
 0x638   :  { %v1245_v19 = vpop.f32.mrf.mxu0 }
 0x639   :  { %335 = vadd.xlane.f32.xlu0 %v1245_v19  ;;  %v334_v20 = vmul.f32 %v1245_v19, %v1245_v19 }
 0x63a   :  { %v926_v12 = vpop.f32.mrf.mxu0 }
 0x63b   :  { %337 = vadd.xlane.f32.xlu1 %v334_v20 }
 0x63c   :  { %v331_v26 = vpop.f32.mrf.mxu0 }
 0x63e   :  { %v927_v13 = vpop.f32.mrf.mxu0 }
 0x6c2   :  { %v336_v27 = vpop.xlane.xlu0 %335 }
 0x6c3   :  { %v339_v14 = vmul.f32 0.0078125, %v336_v27 }
 0x6c4   :  { %v338_v15 = vpop.xlane.xlu1 %337 }
 0x6c5   :  { %v341_v1 = vmul.f32 %v339_v14, %v339_v14  ;;  %v340_v16 = vmul.f32 0.0078125, %v338_v15 }
 0x6c7   :  { %v342_v17 = vsub.f32 %v340_v16, %v341_v1 }
 0x6c9   :  { %v343_v18 = vadd.f32 1e-05, %v342_v17 }
 0x6cb   :  { %999 = vrsqrt.f32 %v343_v18 }
 0x6d8   :  { %v1000_v21 = vpop.eup %999 }
 0x6d9   :  { %v345_v22 = vmul.f32 %v1000_v21, %v1212_v41  ;;  %v976_v41 = vld [vmem:[%s1375_s8 + $0x20] sm:$0xff]  }
 0x6da   :  { %849 = vmatpush3.bf16.msra.mxu1 %v976_v41 }
 0x6db   :  { %350 = vperm.xlu0 %941, %v345_v22   ;;  %v346_v23 = vmul.f32 %v345_v22, %v339_v14  ;;  %850 = vmatprep.subr.bf16.mxu1 %v979_v43  ;;  %v791_v43 = vld [vmem:[%s1376_s9] ss:$0 sm:$0xff] }
 0x6dd   :  { %v347_v24 = vsub.f32 %v1218_v44, %v346_v23  ;;  %v981_v44 = vld [vmem:[%s1375_s8 + $0xd8] sm:$0xff]  }
 0x6de   :  { %872 = vmatprep.subr.bf16.mxu0 %v981_v44  ;;  %851 = vmatpush3.bf16.msra.mxu1 %v980_v45 }
 0x6df   :  { %356 = vperm.xlu1 %942, %v347_v24   ;;  %873 = vmatpush3.bf16.msra.mxu0 %v982_v46 }
 0x6e0   :  { %852 = vmatprep.subr.bf16.mxu1 %v983_v47  ;;  %874 = vmatprep.subr.bf16.mxu0 %v985_v49 }
 0x6e2   :  { %853 = vmatpush3.bf16.msra.mxu1 %v984_v48 }
 0x6e3   :  { %875 = vmatpush3.bf16.msra.mxu0 %v986_v50  ;;  %854 = vmatprep.subr.bf16.mxu1 %v987_v51 }
 0x6e4   :  { %876 = vmatprep.subr.bf16.mxu0 %v989_v54 }
 0x6e6   :  { %855 = vmatpush3.bf16.msra.mxu1 %v988_v53 }
 0x6e7   :  { %877 = vmatpush3.bf16.msra.mxu0 %v990_v55  ;;  %856 = vmatprep.subr.bf16.mxu1 %v991_v57 }
 0x6e8   :  { %878 = vmatprep.subr.bf16.mxu0 %v993_v61 }
 0x6ea   :  { %857 = vmatpush3.bf16.msra.mxu1 %v992_v59 }
 0x6eb   :  { %879 = vmatpush3.bf16.msra.mxu0 %v994_v62 }
 0x756   :  { %v351_v52 = vpop.permute.xlu0 %350 }
 0x757   :  { %v353_v56 = vmul.f32 %v351_v52, %v1245_v19 }
 0x75a   :  { %v357_v58 = vpop.permute.xlu1 %356 }
 0x75b   :  { %v359_v60 = vadd.f32 %v357_v58, %v353_v56 }
 0x75d   :  { %v367_v63 = vrot.slane %v359_v60, 3  ;;  %v377_v0 = vrot.slane %v359_v60, 6  ;;  %v365_v3 = vrot.slane %v359_v60, 2  ;;  %v373_v2 = vrot.slane %v359_v60, 5 }
 0x75e   :  { %v379_v7 = vrot.slane %v359_v60, 7  ;;  %v361_v5 = vrot.slane %v359_v60, 1  ;;  %v371_v8 = vrot.slane %v359_v60, 4 }
 0x75f   :  { %v948_v4 = vpack.i.bf16 %v377_v0, %v367_v63  ;;  %v943_v6 = vpack.i.bf16 %v359_v60, %v365_v3 }
 0x760   :  { %v958_v11 = vpack.i.bf16 %v373_v2, %v379_v7  ;;  %v953_v9 = vpack.i.bf16 %v371_v8, %v361_v5 }
 0x761   :  { %949 = vrot.lane.b32.xlu1 %v948_v4, %s1034_s20  ;;  %944 = vrot.lane.b32.xlu0 %v943_v6, %s1034_s20 }
 0x765   :  { %959 = vrot.lane.b32.xlu1 %v958_v11, %s1034_s20  ;;  %954 = vrot.lane.b32.xlu0 %v953_v9, %s1034_s20 }
 0x7d3   :  { %v950_v10 = vpop.permute.xlu1 %949  ;;  %v945_v19 = vpop.permute.xlu0 %944 }
 0x7d4   :  { %v952_v20 = vunpack.i.h.bf16 %v950_v10  ;;  %v951_v12 = vunpack.i.l.bf16 %v950_v10  ;;  %v947_v26 = vunpack.i.h.bf16 %v945_v19  ;;  %v946_v13 = vunpack.i.l.bf16 %v945_v19 }
 0x7d6   :  { %v407_v27 = vsel %vm383_vm3, %v952_v20, %v379_v7  ;;  %v404_v14 = vsel %vm383_vm3, %v947_v26, %v361_v5  ;;  %v405_v15 = vsel %vm383_vm3, %v946_v13, %v367_v63  ;;  %v385_v1 = vsel %vm383_vm3, %v365_v3, %v951_v12 }
 0x7d7   :  { %v413_v16 = vrot.slane %v405_v15, 7  ;;  %v960_v17 = vpop.permute.xlu1 %959  ;;  %v955_v18 = vpop.permute.xlu0 %954  ;;  %v415_v25 = vrot.slane %v407_v27, 7  ;;  %v412_v28 = vrot.slane %v404_v14, 7 }
 0x7d8   :  { %v962_v21 = vunpack.i.h.bf16 %v960_v17  ;;  %v961_v22 = vunpack.i.l.bf16 %v960_v17  ;;  %v957_v23 = vunpack.i.h.bf16 %v955_v18  ;;  %v956_v24 = vunpack.i.l.bf16 %v955_v18 }
 0x7d9   :  { %v422_v29 = vsel %vm420_vm4, %v385_v1, %v413_v16 }
 0x7da   :  { %v387_v30 = vsel %vm383_vm3, %v377_v0, %v961_v22  ;;  %v406_v31 = vsel %vm383_vm3, %v957_v23, %v373_v2  ;;  %v384_v32 = vsel %vm383_vm3, %v359_v60, %v956_v24  ;;  %v426_v35 = vpack.c.bf16 %v422_v29, %v422_v29 }
 0x7db   :  { %v414_v33 = vrot.slane %v406_v31, 7  ;;  %v421_v34 = vsel %vm420_vm4, %v384_v32, %v412_v28  ;;  %v424_v36 = vsel %vm420_vm4, %v387_v30, %v415_v25  ;;  %v386_v37 = vsel %vm383_vm3, %v371_v8, %v962_v21 }
 0x7dc   :  { %v425_v38 = vpack.c.bf16 %v421_v34, %v421_v34  ;;  %v428_v39 = vpack.c.bf16 %v424_v36, %v424_v36  ;;  %724 = vmatprep.mubr.bf16.mxu1 %v426_v35 }
 0x7dd   :  { %v423_v40 = vsel %vm420_vm4, %v386_v37, %v414_v33 }
 0x7de   :  { %725 = vmatmul.mubr.bf16.vlgmr.msra.gmra.mxu1 %v425_v38  ;;  %764 = vmatprep.mubr.bf16.mxu0 %v428_v39  ;;  %v427_v41 = vpack.c.bf16 %v423_v40, %v423_v40 }
 0x7e0   :  { %765 = vmatmul.mubr.bf16.vlgmr.msra.gmra.mxu0 %v427_v41 }
 0x89e   :  { %v858_v42 = vpop.f32.mrf.mxu1 }
 0x8a0   :  { %v859_v44 = vpop.f32.mrf.mxu1  ;;  %v880_v45 = vpop.f32.mrf.mxu0 }
 0x8a1   :  { %v860_v46 = vadd.f32 %v859_v44, %v858_v42 }
 0x8a2   :  { %v861_v47 = vpop.f32.mrf.mxu1  ;;  %v881_v48 = vpop.f32.mrf.mxu0 }
 0x8a3   :  { %v727_v49 = vadd.f32 %v860_v46, %v791_v43  ;;  %v882_v50 = vadd.f32 %v881_v48, %v880_v45 }
 0x8a4   :  { %v862_v51 = vpop.f32.mrf.mxu1  ;;  %v883_v52 = vpop.f32.mrf.mxu0 }
 0x8a5   :  { %v767_v53 = vadd.f32 %v882_v50, %v727_v49 }
 0x8a6   :  { %v884_v54 = vpop.f32.mrf.mxu0 }
 0x8a7   :  { %773 = vst.msk [vmem:[#allocation2] sm:$0x3] %vm772_vm5, %v767_v53 }
 0x8a8   :  { %1012 = shalt.err (!%p1009_p4)
}
 0x8a9   :  { %783 = dma.vmem_to_hbm [thread:$0]  %s781_s22, 32, %s1377_s10, [#allocation3]  }
 0x8aa   :  { %1021 = dma.done.wait [#allocation3], 32  }
 0x8ab   :  { %1022 = vsyncadd [#allocation3], 4294967264 }
 0x8ac   :  { %787 = vsyncpa [#allocation3], 1 }

</bundles_post_ra>
